<compile_context>
chip_gen: v5e
topology: v5e:2x2
jax: 0.10.0
libtpu: 0.0.40
codegen_flags: <defaults>
</compile_context>

<pallas_src>
import functools

import jax
import jax.numpy as jnp
from jax.experimental import pallas as pl
from jax.experimental.pallas import tpu as pltpu


def _round_up(x, m):
    return (x + m - 1) // m * m


def _gate_kernel(x_ref, w_ref, bias_ref, *out_refs,
                 tot_expert, need_mask, write_logits):
    # [tm, d_model] @ [d_model, e_pad] on the MXU, f32 accumulation.
    logits = jnp.dot(x_ref[...], w_ref[...], preferred_element_type=jnp.float32)

    # Lane-padding columns (>= tot_expert) get a -1e30 additive bias so they
    # contribute ~0 to the softmax denominator.  Skipped when tot_expert is
    # already lane-aligned.
    masked = logits + bias_ref[...] if need_mask else logits

    m = jnp.max(masked, axis=-1, keepdims=True)
    e = jnp.exp(masked - m)
    denom = jnp.sum(e, axis=-1, keepdims=True)
    # Exact divide: the kernel is memory-bound, so the divide is free and rows
    # sum to 1 exactly (the approx reciprocal previously broke normalization).
    probs = e / denom

    if write_logits:
        logits_ref, probs_ref = out_refs
        logits_ref[...] = logits[:, :tot_expert].astype(logits_ref.dtype)
    else:
        (probs_ref,) = out_refs
    probs_ref[...] = probs[:, :tot_expert].astype(probs_ref.dtype)


@functools.partial(jax.jit, static_argnames=("tile_m", "return_logits"))
def gate_forward(x, w_gate, *, tile_m=512, return_logits=True):
    """x: [tokens, d_model], w_gate: [d_model, tot_expert].

    Returns (logits, probs) if return_logits else probs; shapes
    [tokens, tot_expert], dtype of x.
    """
    tokens, d_model = x.shape
    d_model_w, tot_expert = w_gate.shape
    assert d_model == d_model_w

    out_dtype = x.dtype
    x_item = jnp.dtype(x.dtype).itemsize
    w_item = jnp.dtype(w_gate.dtype).itemsize

    # Lane-dense expert axis *inside the kernel only*.
    e_pad = _round_up(max(tot_expert, 128), 128)
    need_mask = e_pad != tot_expert

    # Device VMEM budget (v7x has only 64 MiB/TC; v5e/v6e have 128 MiB).
    try:
        vmem_cap = int(pltpu.get_tpu_info().vmem_capacity_bytes)
    except Exception:
        vmem_cap = 64 * 1024 * 1024  # conservative (v7x per-TensorCore)
    budget = int(vmem_cap * 0.7)

    n_out = 2 if return_logits else 1

    def _est(tm):
        return (2 * tm * d_model * x_item            # x tiles (double-buffered)
                + 2 * d_model * e_pad * w_item       # weight (resident)
                + 2 * e_pad * 4                      # mask bias
                + n_out * 2 * tm * tot_expert * x_item   # output tiles
                + 2 * tm * e_pad * 4)                # f32 intermediates headroom

    # Token tile: multiple of 8 sublanes, at least 2 grid steps (megacore),
    # shrunk until the double-buffered footprint fits the device VMEM budget.
    tm = min(tile_m, max(8, _round_up(pl.cdiv(tokens, 2), 8)))
    while _est(tm) > budget and tm > 8:
        tm = max(8, _round_up(tm // 2, 8))

    grid = (pl.cdiv(tokens, tm),)
    vmem_limit = min(max(int(_est(tm) * 1.5), 16 * 1024 * 1024), budget)

    # Pad only the (tiny) weight to a lane-dense expert axis; x and the outputs
    # stay unpadded (no extra HBM copies).
    w_p = (w_gate if not need_mask
           else jnp.pad(w_gate, ((0, 0), (0, e_pad - tot_expert))))
    col = jnp.arange(e_pad)
    bias = jnp.where(col < tot_expert, 0.0, -1e30).astype(jnp.float32)
    bias = bias.reshape(1, e_pad)

    kernel = functools.partial(_gate_kernel, tot_expert=tot_expert,
                               need_mask=need_mask, write_logits=return_logits)

    out_spec = pl.BlockSpec((tm, tot_expert), lambda i: (i, 0))
    if return_logits:
        out_shape = (jax.ShapeDtypeStruct((tokens, tot_expert), out_dtype),
                     jax.ShapeDtypeStruct((tokens, tot_expert), out_dtype))
        out_specs = (out_spec, out_spec)
    else:
        out_shape = jax.ShapeDtypeStruct((tokens, tot_expert), out_dtype)
        out_specs = out_spec

    return pl.pallas_call(
        kernel,
        out_shape=out_shape,
        grid_spec=pl.GridSpec(
            grid=grid,
            in_specs=[
                # x: streamed token tiles (ragged last tile handled by Pallas).
                pl.BlockSpec((tm, d_model), lambda i: (i, 0)),
                # gate weight: resident (constant index_map -> fetched once).
                pl.BlockSpec((d_model, e_pad), lambda i: (0, 0)),
                # padding-mask bias: tiny resident row.
                pl.BlockSpec((1, e_pad), lambda i: (0, 0)),
            ],
            out_specs=out_specs,
        ),
        compiler_params=pltpu.CompilerParams(
            dimension_semantics=("parallel",),   # token tiles independent
            vmem_limit_bytes=vmem_limit,
        ),
    )(x, w_p, bias)


class BaseGate:
    """JAX/Pallas port of mole.gate.BaseGate (plus the canonical gate fwd)."""

    def __init__(self, num_expert, world_size, d_model=32, key=None):
        self.world_size = world_size
        self.num_expert = num_expert
        self.tot_expert = world_size * num_expert
        self.loss = None
        self.d_model = d_model
        if key is None:
            key = jax.random.PRNGKey(0)
        bound = 1.0 / (d_model ** 0.5)
        # nn.Linear-style weight, stored as [d_model, tot_expert] so the kernel
        # computes logits = x @ w.
        self.w_gate = jax.random.uniform(
            key, (d_model, self.tot_expert), dtype=jnp.float32,
            minval=-bound, maxval=bound,
        )

    def forward(self, x):
        # Canonical gate forward (see module-level note / TODO).
        return gate_forward(x, self.w_gate)

    def set_loss(self, loss):
        self.loss = loss

    def get_loss(self, clear=True):
        loss = self.loss
        if clear:
            self.loss = None
        return loss

    @property
    def has_loss(self):
        return self.loss is not None


if __name__ == "__main__":
    key = jax.random.PRNGKey(0)
    k_x, k_w = jax.random.split(key)

    num_expert, world_size = 4, 2          # tot_expert = 8
    batch, seq, d_model = 2, 8, 32         # tokens = 16

    gate = BaseGate(num_expert, world_size, d_model=d_model, key=k_w)
    x = jax.random.normal(k_x, (batch * seq, d_model), dtype=jnp.float32)

    logits, probs = gate.forward(x)
    logits, probs = jax.block_until_ready((logits, probs))

    # Reference check in plain JAX.
    ref_logits = x @ gate.w_gate
    ref_probs = jax.nn.softmax(ref_logits, axis=-1)
    assert logits.shape == (batch * seq, gate.tot_expert)
    assert probs.shape == (batch * seq, gate.tot_expert)
    assert jnp.allclose(logits, ref_logits, atol=1e-5, rtol=1e-5)
    assert jnp.allclose(probs, ref_probs, atol=1e-4, rtol=1e-4)
    assert jnp.allclose(jnp.sum(probs, axis=-1), 1.0, atol=1e-4)

    # Probs-only fast path (halves HBM writeback for top-k-style callers).
    probs_only = jax.block_until_ready(
        gate_forward(x, gate.w_gate, return_logits=False))
    assert probs_only.shape == (batch * seq, gate.tot_expert)
    assert jnp.allclose(probs_only, probs, atol=1e-6, rtol=1e-6)

    # Exercise the loss bookkeeping API too.
    gate.set_loss(jnp.float32(0.0))
    assert gate.has_loss
    _ = gate.get_loss()
    assert not gate.has_loss

    print("KERNEL_OK")
</pallas_src>

<mosaic_0001>
module attributes {stable_mosaic.version = 11 : i64} {
  func.func @_gate_kernel(%arg0: i32, %arg1: memref<8x32xf32, #tpu.memory_space<vmem>>, %arg2: memref<32x128xf32, #tpu.memory_space<vmem>>, %arg3: memref<1x128xf32, #tpu.memory_space<vmem>>, %arg4: memref<8x8xf32, #tpu.memory_space<vmem>>, %arg5: memref<8x8xf32, #tpu.memory_space<vmem>>) attributes {dimension_semantics = [#tpu.dimension_semantics<parallel>], iteration_bounds = array<i64: 2>, scalar_prefetch = 0 : i64, scratch_operands = 0 : i64, tpu.core_type = #tpu.core_type<tc>, window_params = [{transform_indices = @transform_0, window_bounds = array<i64: 8, 32>}, {pipeline_mode = #tpu.pipeline_mode<synchronous>, transform_indices = @transform_1, window_bounds = array<i64: 32, 128>}, {pipeline_mode = #tpu.pipeline_mode<synchronous>, transform_indices = @transform_2, window_bounds = array<i64: 1, 128>}, {transform_indices = @transform_3, window_bounds = array<i64: 8, 8>}, {transform_indices = @transform_4, window_bounds = array<i64: 8, 8>}]} {
    %c0 = arith.constant 0 : index
    %c0_0 = arith.constant 0 : index
    %0 = vector.load %arg1[%c0, %c0_0] : memref<8x32xf32, #tpu.memory_space<vmem>>, vector<8x32xf32>
    %c0_1 = arith.constant 0 : index
    %c0_2 = arith.constant 0 : index
    %1 = vector.load %arg2[%c0_1, %c0_2] : memref<32x128xf32, #tpu.memory_space<vmem>>, vector<32x128xf32>
    %cst = arith.constant dense<0.000000e+00> : vector<8x128xf32>
    %2 = tpu.matmul %0, %1, %cst {dimension_numbers = #tpu.dot_dimension_numbers<[1], [0], [0], [1], [0, 0, 1, 1], [], []>} : vector<8x32xf32>, vector<32x128xf32>, vector<8x128xf32> -> vector<8x128xf32>
    %c0_3 = arith.constant 0 : index
    %c0_4 = arith.constant 0 : index
    %3 = vector.load %arg3[%c0_3, %c0_4] : memref<1x128xf32, #tpu.memory_space<vmem>>, vector<1x128xf32>
    %4 = vector.broadcast %3 : vector<1x128xf32> to vector<8x128xf32>
    %5 = arith.addf %2, %4 : vector<8x128xf32>
    %cst_5 = arith.constant dense<0xFF800000> : vector<8xf32>
    %6 = vector.multi_reduction <maximumf>, %5, %cst_5 [1] : vector<8x128xf32> to vector<8xf32>
    %7 = vector.shape_cast %6 : vector<8xf32> to vector<8x1xf32>
    %8 = vector.broadcast %7 : vector<8x1xf32> to vector<8x128xf32>
    %9 = arith.subf %5, %8 : vector<8x128xf32>
    %10 = math.exp %9 : vector<8x128xf32>
    %cst_6 = arith.constant dense<0.000000e+00> : vector<8xf32>
    %11 = vector.multi_reduction <add>, %10, %cst_6 [1] : vector<8x128xf32> to vector<8xf32>
    %12 = vector.shape_cast %11 : vector<8xf32> to vector<8x1xf32>
    %13 = vector.broadcast %12 : vector<8x1xf32> to vector<8x128xf32>
    %14 = arith.divf %10, %13 : vector<8x128xf32>
    %15 = vector.extract_strided_slice %2 {offsets = [0, 0], sizes = [8, 8], strides = [1, 1]} : vector<8x128xf32> to vector<8x8xf32>
    %c0_7 = arith.constant 0 : index
    %c0_8 = arith.constant 0 : index
    %16 = vector.load %arg4[%c0_7, %c0_8] : memref<8x8xf32, #tpu.memory_space<vmem>>, vector<8x8xf32>
    tpu.vector_store %arg4[%c0_7, %c0_8], %15 {strides = array<i32>} : memref<8x8xf32, #tpu.memory_space<vmem>>, vector<8x8xf32>,
    %17 = vector.extract_strided_slice %14 {offsets = [0, 0], sizes = [8, 8], strides = [1, 1]} : vector<8x128xf32> to vector<8x8xf32>
    %c0_9 = arith.constant 0 : index
    %c0_10 = arith.constant 0 : index
    %18 = vector.load %arg5[%c0_9, %c0_10] : memref<8x8xf32, #tpu.memory_space<vmem>>, vector<8x8xf32>
    tpu.vector_store %arg5[%c0_9, %c0_10], %17 {strides = array<i32>} : memref<8x8xf32, #tpu.memory_space<vmem>>, vector<8x8xf32>,
    return
  }
  func.func @transform_0(%arg0: i32) -> (i32, i32) {
    %c0_i32 = arith.constant 0 : i32
    %c0_i32_0 = arith.constant 0 : i32
    return %arg0, %c0_i32 : i32, i32
  }
  func.func @transform_1(%arg0: i32) -> (i32, i32) {
    %c0_i32 = arith.constant 0 : i32
    %c0_i32_0 = arith.constant 0 : i32
    %c0_i32_1 = arith.constant 0 : i32
    return %c0_i32, %c0_i32_0 : i32, i32
  }
  func.func @transform_2(%arg0: i32) -> (i32, i32) {
    %c0_i32 = arith.constant 0 : i32
    %c0_i32_0 = arith.constant 0 : i32
    %c0_i32_1 = arith.constant 0 : i32
    return %c0_i32, %c0_i32_0 : i32, i32
  }
  func.func @transform_3(%arg0: i32) -> (i32, i32) {
    %c0_i32 = arith.constant 0 : i32
    %c0_i32_0 = arith.constant 0 : i32
    return %arg0, %c0_i32 : i32, i32
  }
  func.func @transform_4(%arg0: i32) -> (i32, i32) {
    %c0_i32 = arith.constant 0 : i32
    %c0_i32_0 = arith.constant 0 : i32
    return %arg0, %c0_i32 : i32, i32
  }
}

</mosaic_0001>

<bundles_post_ra>
// kernel: gate_forward.1
= control target key start
LH: loop header
LB: loop body
LE: loop exit
PB: predicated region body
PF: predicated region fallthrough
CT: control target
= control target key end

     0   :  { %s404_s15 = smov 0   ;;  %s446_s0 = inlined_call_operand.vmem [shape: f32[16,32], index: 0, kind: input, shape index: {}]   ;;  %s447_s1 = inlined_call_operand.vmem [shape: f32[32,128], index: 1, kind: input, shape index: {}]   ;;  %s448_s2 = inlined_call_operand.vmem [shape: f32[1,128], index: 2, kind: input, shape index: {}]   ;;  %s449_s3 = inlined_call_operand.vmem [shape: f32[16,8], index: 3, kind: output, shape index: {0}]   ;;  %s450_s4 = inlined_call_operand.vmem [shape: f32[16,8], index: 4, kind: output, shape index: {1}]  }
   0x1 LB: > { %s347_s16 = sadd.s32 4294967295, %s377_s15   ;;  %p351_p0 = scmp.ge.s32.totalorder %s377_s15, 1  ;;  %s377_s15 = sphi %s404_s15, %s15_s15  }
   0x2   : > { %p164_p1 = scmp.lt.s32.totalorder %s377_s15, 3 }
   0x4   : > { %p165_p2 = pnand %p351_p0, %p164_p1 }
   0x5   : > { %p192_p3 = scmp.lt.s32.totalorder (!%p165_p2), %s347_s16, 1 }
   0x6   : > { %168 = sbr.rel (%p165_p2) target bundleno = 410 (0x19a), region = 32 }
   0xb   : > { %v208_v0 = vld [vmem:[%s447_s1 + $0x18] sm:$0xff]  ;;  %v207_v1 = vld [vmem:[%s447_s1 + $0x10] sm:$0xff]  ;;  %v206_v2 = vld [vmem:[%s447_s1 + $0x8] sm:$0xff]  ;;  %s452_s16 = smov (!%p192_p3, %s347_s16), 1  ;;  %vm209_vm0 = vcmask 261120   ;;  %vm260_vm1 = vcmask 64512  }
   0xc   : > { %225 = vmatpush.msra.mxu0 %v208_v0  ;;  %v205_v3 = vld [vmem:[%s447_s1] sm:$0xff]  ;;  %s424_s25 = sshll.u32 %s452_s16, 3 }
   0xd   : > { %s195_s28 = scalar_lea.vmem %s446_s0, %s424_s25  ;;  %v366_v5 = vld [vmem:[%s448_s2] ss:$0 sm:$0xff]  ;;  %s199_s7 = scalar_lea.vmem %s449_s3, %s424_s25 }
   0xe   : > { %226 = vmatpush.msra.mxu0 %v207_v1  ;;  %v204_v4 = vld [vmem:[%s195_s28] sm:$0xff]  ;;  %s203_s10 = scalar_lea.vmem %s450_s4, %s424_s25 }
  0x10   : > { %227 = vmatpush.msra.mxu0 %v206_v2 }
  0x12   : > { %228 = vmatpush.msra.mxu0 %v205_v3 }
  0x13   : > { %355 = vmatmul.msk.f32.vlgmr.msra.gmra.mxu0 %vm209_vm0, %v204_v4 }
  0x90   : > { %v230_v6 = vpop.f32.mrf.mxu0 }
  0x91   : > { %v237_v7 = vadd.f32 %v366_v5, %v230_v6  ;;  %261 = vst.msk [vmem:[%s199_s7] sm:$0xff] %vm260_vm1, %v230_v6 }
  0x93   : > { %238 = vmax.xlane.f32.xlu0 %v237_v7 }
 0x106   : > { %v239_v8 = vpop.xlane.xlu0 %238 }
 0x107   : > { %v240_v9 = vsub.f32 %v237_v7, %v239_v8 }
 0x109   : > { %v241_v10 = vmul.f32 1.442695, %v240_v9 }
 0x10b   : > { %367 = vpow2.f32 %v241_v10 }
 0x111   : > { %v368_v11 = vpop.eup %367 }
 0x112   : > { %243 = vadd.xlane.f32.xlu0 %v368_v11 }
 0x185   : > { %v244_v12 = vpop.xlane.xlu0 %243 }
 0x186   : > { %369 = vrcp.f32 %v244_v12  ;;  %v256_v16 = vand.u32 2147483648, %v244_v12  ;;  %v254_v18 = vand.u32 2147483647, %v244_v12  ;;  %vm250_vm3 = vweird.f32 %v244_v12 }
 0x188   : > { %v257_v20 = vor.u32 1.1754944e-38, %v256_v16  ;;  %vm255_vm5 = vcmp.eq.f32.partialorder %v254_v18, 8.507059e+37 }
 0x18c   : > { %v370_v13 = vpop.eup %369 }
 0x18d   : > { %v246_v14 = vmul.f32 %v370_v13, %v244_v12  ;;  %vm251_vm2 = vweird.f32 %v370_v13 }
 0x18e   : > { %vm252_vm4 = vmor %vm250_vm3, %vm251_vm2 }
 0x18f   : > { %v247_v15 = vsub.f32 1.0, %v246_v14 }
 0x191   : > { %v248_v17 = vmul.f32 %v370_v13, %v247_v15 }
 0x193   : > { %v249_v19 = vadd.f32 %v370_v13, %v248_v17 }
 0x195   : > { %v253_v21 = vsel %vm252_vm4, %v370_v13, %v249_v19 }
 0x196   : > { %v258_v22 = vsel %vm255_vm5, %v257_v20, %v253_v21 }
 0x197   : > { %v259_v23 = vmul.f32 %v368_v11, %v258_v22 }
 0x199   : > { %262 = vst.msk [vmem:[%s203_s10] sm:$0xff] %vm260_vm1, %v259_v23 }
 0x19a PF: > { %s15_s15 = sadd.s32 1, %s377_s15  }
 0x19b   : > { %p12_p4 = scmp.ge.s32.totalorder %s15_s15, 4  }
 0x19d   :  { %14 = sbr.rel (!%p12_p4) target bundleno = 1 (0x1), region = 74 }

</bundles_post_ra>
